<compile_context>
chip_gen: v5e
topology: v5e:2x2
jax: 0.10.0
libtpu: 0.0.40
codegen_flags: <defaults>
</compile_context>

<pallas_src>
import functools
import numpy as np
import jax
import jax.numpy as jnp
from jax import lax
from jax.experimental import pallas as pl
from jax.experimental.pallas import tpu as pltpu

KMAX = 7                      # unified tap window (largest branch kernel)
PAD = (KMAX - 1) // 2
BN_EPS = 1e-5


# ----------------------------- Pallas kernel ------------------------------ #
def mixed_scale_kernel(x_ref, wc_ref, wo_ref, p_ref, o_ref, *,
                       H, WC, num_images, act):
    # x_ref block: (num_images*H, WC) lane-dense rows (whole images).
    # wc_ref: (3, WC, 2*WC)  combined [branch2 | branch1] band matrices, dh-PAD in {-1,0,1}
    # wo_ref: (4, WC, WC)    branch-2-only band matrices, dh-PAD in {-3,-2,+2,+3}
    # p_ref : (5, WC)        folded BN / mask vectors [s1, b1, m1, s2, b2]
    s1 = p_ref[0]; b1 = p_ref[1]; m1 = p_ref[2]; s2 = p_ref[3]; b2 = p_ref[4]

    def act_fn(y):
        if act == 'relu':
            return jnp.maximum(y, 0.0)
        # Hswish: y * relu6(y + 3) / 6
        return y * jnp.clip(y + 3.0, 0.0, 6.0) * (1.0 / 6.0)

    zrows = jnp.zeros((PAD, WC), x_ref.dtype)

    for img in range(num_images):                     # static sub-tiling per image
        xi = x_ref[img * H:(img + 1) * H, :]          # (H, WC) static slice
        xpad = jnp.concatenate([zrows, xi, zrows], axis=0)   # in-kernel zero H halo
        acc1 = jnp.zeros((H, WC), jnp.float32)        # branch 1 (Identity | 3x3)
        acc2 = jnp.zeros((H, WC), jnp.float32)        # branch 2 (5x5 | 7x7)
        out_i = 0
        for dh in range(KMAX):                        # 7 hoisted static row shifts
            xh = xpad[dh:dh + H, :]                   # (H, WC)
            if 2 <= dh <= 4:
                # One MXU matmul yields both branches (columns [0:WC] -> branch2,
                # columns [WC:2WC] -> branch1).
                y = jnp.dot(xh, wc_ref[dh - 2],
                            preferred_element_type=jnp.float32)     # (H, 2*WC)
                acc2 = acc2 + y[:, :WC]
                acc1 = acc1 + y[:, WC:]
            else:
                acc2 = acc2 + jnp.dot(xh, wo_ref[out_i],
                                      preferred_element_type=jnp.float32)
                out_i += 1

        # Folded eval-mode BN + activation epilogue (per-lane vectors).
        y1 = jnp.where(m1 > 0.0, act_fn(acc1 * s1 + b1), acc1)  # Identity lanes skip BN+act
        y2 = act_fn(acc2 * s2 + b2)
        o_ref[img * H:(img + 1) * H, :] = (y1 + y2).astype(o_ref.dtype)


# ------------------------------ wrapper ----------------------------------- #
def mixed_scale_forward(x_nhwc, w_cen, w_out, params, act='relu',
                        images_per_step=None, compute_dtype=jnp.float32):
    N, H, W, C = x_nhwc.shape
    WC = W * C
    # TODO(synk): general shapes would need tiling of the flattened lane axis.
    assert WC % 128 == 0, "flattened W*C must be a multiple of 128 lanes"
    assert H % 8 == 0, "H must be sublane-aligned for row-blocked tiling"

    if images_per_step is None:
        # Keep >= 2 grid steps (v7x has 2 TensorCores; grid axis is "parallel")
        # and cap the block at <= 256 rows (DMA amortization without spilling).
        images_per_step = 1
        max_nb = N if N < 2 else max(1, N // 2)
        for nb in range(1, max_nb + 1):
            if N % nb == 0 and nb * H <= 256:
                images_per_step = nb
    Nb = images_per_step
    assert N % Nb == 0
    R = Nb * H

    x_flat = x_nhwc.reshape(N * H, WC).astype(compute_dtype)   # contiguous reshape
    w_cen = w_cen.astype(compute_dtype)
    w_out = w_out.astype(compute_dtype)

    kern = functools.partial(mixed_scale_kernel, H=H, WC=WC,
                             num_images=Nb, act=act)
    out_flat = pl.pallas_call(
        kern,
        out_shape=jax.ShapeDtypeStruct((N * H, WC), x_nhwc.dtype),
        grid_spec=pltpu.PrefetchScalarGridSpec(
            num_scalar_prefetch=0,
            grid=(N // Nb,),
            in_specs=[
                pl.BlockSpec((R, WC), lambda n: (n, 0)),
                pl.BlockSpec(w_cen.shape, lambda n: (0, 0, 0)),
                pl.BlockSpec(w_out.shape, lambda n: (0, 0, 0)),
                pl.BlockSpec(params.shape, lambda n: (0, 0)),
            ],
            out_specs=pl.BlockSpec((R, WC), lambda n: (n, 0)),
        ),
        compiler_params=pltpu.CompilerParams(
            dimension_semantics=("parallel",)),
    )(x_flat, w_cen, w_out, params)
    return out_flat.reshape(N, H, W, C)


# ----------------------- parameter / reference helpers --------------------- #
def build_band_matrices(T1, T2, W, C):
    """Fold the W-direction taps into banded lane-mixing matrices for the MXU.

    T1: (3,3,C) branch-1 taps (Identity center tap / 3x3 dwconv).
    T2: (7,7,C) branch-2 taps (5x5 centered / 7x7 dwconv).
    Returns:
      w_cen (3, WC, 2*WC): columns [0:WC] = branch-2 band, [WC:2WC] = branch-1 band,
                           for the 3 central row offsets (dh-PAD in {-1,0,1}).
      w_out (4, WC, WC)  : branch-2-only band matrices for the 4 outer row offsets.
    The W image-boundary zeros are baked into the band structure.
    """
    WC = W * C

    def band(taps_dw):                       # taps_dw: (k, C) -> (WC, WC)
        k = taps_dw.shape[0]
        pad = (k - 1) // 2
        M = np.zeros((WC, WC), np.float32)
        cidx = np.arange(C)
        for dw in range(k):
            off = dw - pad
            for w in range(W):
                wi = w + off                 # input column for output column w
                if 0 <= wi < W:
                    M[wi * C + cidx, w * C + cidx] = taps_dw[dw]
        return M

    w_cen = np.zeros((3, WC, 2 * WC), np.float32)
    w_out = np.zeros((4, WC, WC), np.float32)
    out_i = 0
    for dh in range(KMAX):
        M2 = band(T2[dh])
        if 2 <= dh <= 4:
            w_cen[dh - 2, :, :WC] = M2
            w_cen[dh - 2, :, WC:] = band(T1[dh - 2])
        else:
            w_out[out_i] = M2
            out_i += 1
    return w_cen, w_out


def bn_fold(gamma, beta, mean, var):
    s = gamma / np.sqrt(var + BN_EPS)
    return s, beta - mean * s


def dw_conv_ref(x_nhwc, w_torch, pad):
    """Pure-JAX depthwise conv (groups=C) reference, NHWC."""
    C = x_nhwc.shape[-1]
    w = jnp.transpose(w_torch[:, 0], (1, 2, 0))[..., None, :]   # (k,k,1,C) HWIO
    return lax.conv_general_dilated(
        x_nhwc, w, (1, 1), [(pad, pad), (pad, pad)],
        dimension_numbers=('NHWC', 'HWIO', 'NHWC'),
        feature_group_count=C)


def bn_relu_ref(y, gamma, beta, mean, var):
    return jnp.maximum((y - mean) / jnp.sqrt(var + BN_EPS) * gamma + beta, 0.0)


# ---------------------------------- main ----------------------------------- #
if __name__ == "__main__":
    # MixedScaleModule(C_in=8, C_out=8, conn_encoding=[1,1,1,1], stride=1, 'relu')
    #   branch1_1 = [Identity, DW_Conv(4,4,k=3)+BN+ReLU]
    #   branch1_2 = [DW_Conv(4,4,k=5)+BN+ReLU, DW_Conv(4,4,k=7)+BN+ReLU]
    N, C_in, H, W = 2, 8, 16, 16
    Csplit = C_in // 2

    key = jax.random.PRNGKey(0)
    ks = jax.random.split(key, 16)
    x_nchw = jax.random.normal(ks[0], (N, C_in, H, W), jnp.float32)

    # Depthwise conv weights (PyTorch layout (C,1,k,k)), deterministic.
    w3 = 0.2 * np.asarray(jax.random.normal(ks[1], (Csplit, 1, 3, 3)), np.float32)
    w5 = 0.2 * np.asarray(jax.random.normal(ks[2], (Csplit, 1, 5, 5)), np.float32)
    w7 = 0.2 * np.asarray(jax.random.normal(ks[3], (Csplit, 1, 7, 7)), np.float32)

    # Eval-mode BatchNorm parameters, deterministic.
    def make_bn(k_gamma, k_beta, k_mu, k_var, c):
        gamma = np.asarray(jax.random.uniform(k_gamma, (c,), minval=0.5, maxval=1.5), np.float32)
        beta = 0.1 * np.asarray(jax.random.normal(k_beta, (c,)), np.float32)
        mu = 0.1 * np.asarray(jax.random.normal(k_mu, (c,)), np.float32)
        var = np.asarray(jax.random.uniform(k_var, (c,), minval=0.5, maxval=1.5), np.float32)
        return gamma, beta, mu, var

    bn3 = make_bn(ks[4], ks[5], ks[6], ks[7], Csplit)
    bn5 = make_bn(ks[8], ks[9], ks[10], ks[11], Csplit)
    bn7 = make_bn(ks[12], ks[13], ks[14], ks[15], Csplit)

    # Per-channel tap tables (branch 1 only needs the central 3x3 window).
    T1 = np.zeros((3, 3, C_in), np.float32)
    T1[1, 1, :Csplit] = 1.0                                   # Identity: center tap
    T1[:, :, Csplit:] = np.transpose(w3[:, 0], (1, 2, 0))     # 3x3 dwconv taps
    T2 = np.zeros((KMAX, KMAX, C_in), np.float32)
    T2[1:6, 1:6, :Csplit] = np.transpose(w5[:, 0], (1, 2, 0))  # 5x5 centered in 7x7
    T2[:, :, Csplit:] = np.transpose(w7[:, 0], (1, 2, 0))      # 7x7 dwconv taps

    # Banded lane-mixing matrices for the MXU path.
    W_cen, W_out = build_band_matrices(T1, T2, W, C_in)        # (3,128,256), (4,128,128)

    # Folded BN scale/shift per channel, tiled to lane-dense (W*C,) rows and
    # packed into a single parameter block [s1, b1, m1, s2, b2].
    s3, b3 = bn_fold(*bn3)
    s5, b5 = bn_fold(*bn5)
    s7, b7 = bn_fold(*bn7)
    s1_c = np.concatenate([np.ones(Csplit, np.float32), s3])
    b1_c = np.concatenate([np.zeros(Csplit, np.float32), b3])
    m1_c = np.concatenate([np.zeros(Csplit, np.float32), np.ones(Csplit, np.float32)])
    s2_c = np.concatenate([s5, s7])
    b2_c = np.concatenate([b5, b7])
    params = np.stack([np.tile(v.astype(np.float32), W)
                       for v in (s1_c, b1_c, m1_c, s2_c, b2_c)])   # (5, W*C)

    x_nhwc = jnp.transpose(x_nchw, (0, 2, 3, 1))

    out = mixed_scale_forward(
        x_nhwc,
        jnp.asarray(W_cen), jnp.asarray(W_out), jnp.asarray(params),
        act='relu')
    out = jax.block_until_ready(out)

    # Pure-JAX reference of the PyTorch forward (NHWC view of NCHW semantics).
    x0, x1 = x_nhwc[..., :Csplit], x_nhwc[..., Csplit:]
    out1 = jnp.concatenate(
        [x0, bn_relu_ref(dw_conv_ref(x1, jnp.asarray(w3), 1), *bn3)], axis=-1)
    out2 = jnp.concatenate(
        [bn_relu_ref(dw_conv_ref(x0, jnp.asarray(w5), 2), *bn5),
         bn_relu_ref(dw_conv_ref(x1, jnp.asarray(w7), 3), *bn7)], axis=-1)
    ref = out1 + out2

    np.testing.assert_allclose(np.asarray(out), np.asarray(ref),
                               rtol=1e-4, atol=1e-4)
    print("KERNEL_OK")
</pallas_src>

<mosaic_0001>
module attributes {stable_mosaic.version = 11 : i64} {
  func.func @mixed_scale_kernel(%arg0: i32, %arg1: memref<16x128xf32, #tpu.memory_space<vmem>>, %arg2: memref<3x128x256xf32, #tpu.memory_space<vmem>>, %arg3: memref<4x128x128xf32, #tpu.memory_space<vmem>>, %arg4: memref<5x128xf32, #tpu.memory_space<vmem>>, %arg5: memref<16x128xf32, #tpu.memory_space<vmem>>) attributes {dimension_semantics = [#tpu.dimension_semantics<parallel>], iteration_bounds = array<i64: 2>, scalar_prefetch = 0 : i64, scratch_operands = 0 : i64, tpu.core_type = #tpu.core_type<tc>, window_params = [{transform_indices = @transform_0, window_bounds = array<i64: 16, 128>}, {pipeline_mode = #tpu.pipeline_mode<synchronous>, transform_indices = @transform_1, window_bounds = array<i64: 3, 128, 256>}, {pipeline_mode = #tpu.pipeline_mode<synchronous>, transform_indices = @transform_2, window_bounds = array<i64: 4, 128, 128>}, {pipeline_mode = #tpu.pipeline_mode<synchronous>, transform_indices = @transform_3, window_bounds = array<i64: 5, 128>}, {transform_indices = @transform_4, window_bounds = array<i64: 16, 128>}]} {
    %c0 = arith.constant 0 : index
    %c0_0 = arith.constant 0 : index
    %0 = vector.load %arg4[%c0, %c0_0] : memref<5x128xf32, #tpu.memory_space<vmem>>, vector<1x128xf32>
    %1 = vector.shape_cast %0 : vector<1x128xf32> to vector<128xf32>
    %c1 = arith.constant 1 : index
    %c0_1 = arith.constant 0 : index
    %2 = vector.load %arg4[%c1, %c0_1] : memref<5x128xf32, #tpu.memory_space<vmem>>, vector<1x128xf32>
    %3 = vector.shape_cast %2 : vector<1x128xf32> to vector<128xf32>
    %c2 = arith.constant 2 : index
    %c0_2 = arith.constant 0 : index
    %4 = vector.load %arg4[%c2, %c0_2] : memref<5x128xf32, #tpu.memory_space<vmem>>, vector<1x128xf32>
    %5 = vector.shape_cast %4 : vector<1x128xf32> to vector<128xf32>
    %c3 = arith.constant 3 : index
    %c0_3 = arith.constant 0 : index
    %6 = vector.load %arg4[%c3, %c0_3] : memref<5x128xf32, #tpu.memory_space<vmem>>, vector<1x128xf32>
    %7 = vector.shape_cast %6 : vector<1x128xf32> to vector<128xf32>
    %c4 = arith.constant 4 : index
    %c0_4 = arith.constant 0 : index
    %8 = vector.load %arg4[%c4, %c0_4] : memref<5x128xf32, #tpu.memory_space<vmem>>, vector<1x128xf32>
    %9 = vector.shape_cast %8 : vector<1x128xf32> to vector<128xf32>
    %cst = arith.constant 0.000000e+00 : f32
    %10 = vector.broadcast %cst : f32 to vector<3x128xf32>
    %c0_5 = arith.constant 0 : index
    %c0_6 = arith.constant 0 : index
    %11 = vector.load %arg1[%c0_5, %c0_6] : memref<16x128xf32, #tpu.memory_space<vmem>>, vector<16x128xf32>
    %12 = tpu.concatenate %10, %11, %10 in 0 : vector<3x128xf32>, vector<16x128xf32>, vector<3x128xf32> -> vector<22x128xf32>
    %cst_7 = arith.constant 0.000000e+00 : f32
    %13 = vector.broadcast %cst_7 : f32 to vector<16x128xf32>
    %cst_8 = arith.constant 0.000000e+00 : f32
    %14 = vector.broadcast %cst_8 : f32 to vector<16x128xf32>
    %15 = vector.extract_strided_slice %12 {offsets = [0, 0], sizes = [16, 128], strides = [1, 1]} : vector<22x128xf32> to vector<16x128xf32>
    %c0_9 = arith.constant 0 : index
    %c0_10 = arith.constant 0 : index
    %c0_11 = arith.constant 0 : index
    %16 = vector.load %arg3[%c0_9, %c0_10, %c0_11] : memref<4x128x128xf32, #tpu.memory_space<vmem>>, vector<1x128x128xf32>
    %17 = vector.shape_cast %16 : vector<1x128x128xf32> to vector<128x128xf32>
    %cst_12 = arith.constant dense<0.000000e+00> : vector<16x128xf32>
    %18 = tpu.matmul %15, %17, %cst_12 {dimension_numbers = #tpu.dot_dimension_numbers<[1], [0], [0], [1], [0, 0, 1, 1], [], []>} : vector<16x128xf32>, vector<128x128xf32>, vector<16x128xf32> -> vector<16x128xf32>
    %19 = arith.addf %14, %18 : vector<16x128xf32>
    %20 = vector.extract_strided_slice %12 {offsets = [1, 0], sizes = [16, 128], strides = [1, 1]} : vector<22x128xf32> to vector<16x128xf32>
    %c1_13 = arith.constant 1 : index
    %c0_14 = arith.constant 0 : index
    %c0_15 = arith.constant 0 : index
    %21 = vector.load %arg3[%c1_13, %c0_14, %c0_15] : memref<4x128x128xf32, #tpu.memory_space<vmem>>, vector<1x128x128xf32>
    %22 = vector.shape_cast %21 : vector<1x128x128xf32> to vector<128x128xf32>
    %cst_16 = arith.constant dense<0.000000e+00> : vector<16x128xf32>
    %23 = tpu.matmul %20, %22, %cst_16 {dimension_numbers = #tpu.dot_dimension_numbers<[1], [0], [0], [1], [0, 0, 1, 1], [], []>} : vector<16x128xf32>, vector<128x128xf32>, vector<16x128xf32> -> vector<16x128xf32>
    %24 = arith.addf %19, %23 : vector<16x128xf32>
    %25 = vector.extract_strided_slice %12 {offsets = [2, 0], sizes = [16, 128], strides = [1, 1]} : vector<22x128xf32> to vector<16x128xf32>
    %c0_17 = arith.constant 0 : index
    %c0_18 = arith.constant 0 : index
    %c0_19 = arith.constant 0 : index
    %26 = vector.load %arg2[%c0_17, %c0_18, %c0_19] : memref<3x128x256xf32, #tpu.memory_space<vmem>>, vector<1x128x256xf32>
    %27 = vector.shape_cast %26 : vector<1x128x256xf32> to vector<128x256xf32>
    %cst_20 = arith.constant dense<0.000000e+00> : vector<16x256xf32>
    %28 = tpu.matmul %25, %27, %cst_20 {dimension_numbers = #tpu.dot_dimension_numbers<[1], [0], [0], [1], [0, 0, 1, 1], [], []>} : vector<16x128xf32>, vector<128x256xf32>, vector<16x256xf32> -> vector<16x256xf32>
    %29 = vector.extract_strided_slice %28 {offsets = [0, 0], sizes = [16, 128], strides = [1, 1]} : vector<16x256xf32> to vector<16x128xf32>
    %30 = arith.addf %24, %29 : vector<16x128xf32>
    %31 = vector.extract_strided_slice %28 {offsets = [0, 128], sizes = [16, 128], strides = [1, 1]} : vector<16x256xf32> to vector<16x128xf32>
    %32 = arith.addf %13, %31 : vector<16x128xf32>
    %33 = vector.extract_strided_slice %12 {offsets = [3, 0], sizes = [16, 128], strides = [1, 1]} : vector<22x128xf32> to vector<16x128xf32>
    %c1_21 = arith.constant 1 : index
    %c0_22 = arith.constant 0 : index
    %c0_23 = arith.constant 0 : index
    %34 = vector.load %arg2[%c1_21, %c0_22, %c0_23] : memref<3x128x256xf32, #tpu.memory_space<vmem>>, vector<1x128x256xf32>
    %35 = vector.shape_cast %34 : vector<1x128x256xf32> to vector<128x256xf32>
    %cst_24 = arith.constant dense<0.000000e+00> : vector<16x256xf32>
    %36 = tpu.matmul %33, %35, %cst_24 {dimension_numbers = #tpu.dot_dimension_numbers<[1], [0], [0], [1], [0, 0, 1, 1], [], []>} : vector<16x128xf32>, vector<128x256xf32>, vector<16x256xf32> -> vector<16x256xf32>
    %37 = vector.extract_strided_slice %36 {offsets = [0, 0], sizes = [16, 128], strides = [1, 1]} : vector<16x256xf32> to vector<16x128xf32>
    %38 = arith.addf %30, %37 : vector<16x128xf32>
    %39 = vector.extract_strided_slice %36 {offsets = [0, 128], sizes = [16, 128], strides = [1, 1]} : vector<16x256xf32> to vector<16x128xf32>
    %40 = arith.addf %32, %39 : vector<16x128xf32>
    %41 = vector.extract_strided_slice %12 {offsets = [4, 0], sizes = [16, 128], strides = [1, 1]} : vector<22x128xf32> to vector<16x128xf32>
    %c2_25 = arith.constant 2 : index
    %c0_26 = arith.constant 0 : index
    %c0_27 = arith.constant 0 : index
    %42 = vector.load %arg2[%c2_25, %c0_26, %c0_27] : memref<3x128x256xf32, #tpu.memory_space<vmem>>, vector<1x128x256xf32>
    %43 = vector.shape_cast %42 : vector<1x128x256xf32> to vector<128x256xf32>
    %cst_28 = arith.constant dense<0.000000e+00> : vector<16x256xf32>
    %44 = tpu.matmul %41, %43, %cst_28 {dimension_numbers = #tpu.dot_dimension_numbers<[1], [0], [0], [1], [0, 0, 1, 1], [], []>} : vector<16x128xf32>, vector<128x256xf32>, vector<16x256xf32> -> vector<16x256xf32>
    %45 = vector.extract_strided_slice %44 {offsets = [0, 0], sizes = [16, 128], strides = [1, 1]} : vector<16x256xf32> to vector<16x128xf32>
    %46 = arith.addf %38, %45 : vector<16x128xf32>
    %47 = vector.extract_strided_slice %44 {offsets = [0, 128], sizes = [16, 128], strides = [1, 1]} : vector<16x256xf32> to vector<16x128xf32>
    %48 = arith.addf %40, %47 : vector<16x128xf32>
    %49 = vector.extract_strided_slice %12 {offsets = [5, 0], sizes = [16, 128], strides = [1, 1]} : vector<22x128xf32> to vector<16x128xf32>
    %c2_29 = arith.constant 2 : index
    %c0_30 = arith.constant 0 : index
    %c0_31 = arith.constant 0 : index
    %50 = vector.load %arg3[%c2_29, %c0_30, %c0_31] : memref<4x128x128xf32, #tpu.memory_space<vmem>>, vector<1x128x128xf32>
    %51 = vector.shape_cast %50 : vector<1x128x128xf32> to vector<128x128xf32>
    %cst_32 = arith.constant dense<0.000000e+00> : vector<16x128xf32>
    %52 = tpu.matmul %49, %51, %cst_32 {dimension_numbers = #tpu.dot_dimension_numbers<[1], [0], [0], [1], [0, 0, 1, 1], [], []>} : vector<16x128xf32>, vector<128x128xf32>, vector<16x128xf32> -> vector<16x128xf32>
    %53 = arith.addf %46, %52 : vector<16x128xf32>
    %54 = vector.extract_strided_slice %12 {offsets = [6, 0], sizes = [16, 128], strides = [1, 1]} : vector<22x128xf32> to vector<16x128xf32>
    %c3_33 = arith.constant 3 : index
    %c0_34 = arith.constant 0 : index
    %c0_35 = arith.constant 0 : index
    %55 = vector.load %arg3[%c3_33, %c0_34, %c0_35] : memref<4x128x128xf32, #tpu.memory_space<vmem>>, vector<1x128x128xf32>
    %56 = vector.shape_cast %55 : vector<1x128x128xf32> to vector<128x128xf32>
    %cst_36 = arith.constant dense<0.000000e+00> : vector<16x128xf32>
    %57 = tpu.matmul %54, %56, %cst_36 {dimension_numbers = #tpu.dot_dimension_numbers<[1], [0], [0], [1], [0, 0, 1, 1], [], []>} : vector<16x128xf32>, vector<128x128xf32>, vector<16x128xf32> -> vector<16x128xf32>
    %58 = arith.addf %53, %57 : vector<16x128xf32>
    %cst_37 = arith.constant 0.000000e+00 : f32
    %59 = vector.broadcast %cst_37 : f32 to vector<128xf32>
    %60 = arith.cmpf ogt, %5, %59 : vector<128xf32>
    %61 = vector.shape_cast %1 : vector<128xf32> to vector<1x128xf32>
    %62 = vector.broadcast %61 : vector<1x128xf32> to vector<16x128xf32>
    %63 = arith.mulf %48, %62 : vector<16x128xf32>
    %64 = vector.shape_cast %3 : vector<128xf32> to vector<1x128xf32>
    %65 = vector.broadcast %64 : vector<1x128xf32> to vector<16x128xf32>
    %66 = arith.addf %63, %65 : vector<16x128xf32>
    %cst_38 = arith.constant 0.000000e+00 : f32
    %67 = vector.broadcast %cst_38 : f32 to vector<16x128xf32>
    %68 = arith.maximumf %66, %67 : vector<16x128xf32>
    %69 = vector.shape_cast %60 : vector<128xi1> to vector<1x128xi1>
    %70 = vector.broadcast %69 : vector<1x128xi1> to vector<16x128xi1>
    %71 = arith.select %70, %68, %48 : vector<16x128xi1>, vector<16x128xf32>
    %72 = vector.shape_cast %7 : vector<128xf32> to vector<1x128xf32>
    %73 = vector.broadcast %72 : vector<1x128xf32> to vector<16x128xf32>
    %74 = arith.mulf %58, %73 : vector<16x128xf32>
    %75 = vector.shape_cast %9 : vector<128xf32> to vector<1x128xf32>
    %76 = vector.broadcast %75 : vector<1x128xf32> to vector<16x128xf32>
    %77 = arith.addf %74, %76 : vector<16x128xf32>
    %cst_39 = arith.constant 0.000000e+00 : f32
    %78 = vector.broadcast %cst_39 : f32 to vector<16x128xf32>
    %79 = arith.maximumf %77, %78 : vector<16x128xf32>
    %80 = arith.addf %71, %79 : vector<16x128xf32>
    %c0_40 = arith.constant 0 : index
    %c0_41 = arith.constant 0 : index
    %81 = vector.load %arg5[%c0_40, %c0_41] : memref<16x128xf32, #tpu.memory_space<vmem>>, vector<16x128xf32>
    tpu.vector_store %arg5[%c0_40, %c0_41], %80 {strides = array<i32>} : memref<16x128xf32, #tpu.memory_space<vmem>>, vector<16x128xf32>,
    return
  }
  func.func @transform_0(%arg0: i32) -> (i32, i32) {
    %c0_i32 = arith.constant 0 : i32
    %c0_i32_0 = arith.constant 0 : i32
    return %arg0, %c0_i32 : i32, i32
  }
  func.func @transform_1(%arg0: i32) -> (i32, i32, i32) {
    %c0_i32 = arith.constant 0 : i32
    %c0_i32_0 = arith.constant 0 : i32
    %c0_i32_1 = arith.constant 0 : i32
    %c0_i32_2 = arith.constant 0 : i32
    return %c0_i32, %c0_i32_0, %c0_i32_1 : i32, i32, i32
  }
  func.func @transform_2(%arg0: i32) -> (i32, i32, i32) {
    %c0_i32 = arith.constant 0 : i32
    %c0_i32_0 = arith.constant 0 : i32
    %c0_i32_1 = arith.constant 0 : i32
    %c0_i32_2 = arith.constant 0 : i32
    return %c0_i32, %c0_i32_0, %c0_i32_1 : i32, i32, i32
  }
  func.func @transform_3(%arg0: i32) -> (i32, i32) {
    %c0_i32 = arith.constant 0 : i32
    %c0_i32_0 = arith.constant 0 : i32
    %c0_i32_1 = arith.constant 0 : i32
    return %c0_i32, %c0_i32_0 : i32, i32
  }
  func.func @transform_4(%arg0: i32) -> (i32, i32) {
    %c0_i32 = arith.constant 0 : i32
    %c0_i32_0 = arith.constant 0 : i32
    return %arg0, %c0_i32 : i32, i32
  }
}

</mosaic_0001>

<bundles_post_ra>
// kernel: tpu_custom_call.1
= control target key start
LH: loop header
LB: loop body
LE: loop exit
PB: predicated region body
PF: predicated region fallthrough
CT: control target
= control target key end

     0   :  { %9 = vsyncpa [#allocation3], 0  ;;  %s1733_s0 = inlined_call_operand.hbm [shape: f32[32,128], index: 0, kind: input, shape index: {}]   ;;  %s1734_s1 = inlined_call_operand.hbm [shape: f32[3,128,256], index: 1, kind: input, shape index: {}]   ;;  %s1735_s2 = inlined_call_operand.hbm [shape: f32[4,128,128], index: 2, kind: input, shape index: {}]   ;;  %s1736_s3 = inlined_call_operand.hbm [shape: f32[5,128], index: 3, kind: input, shape index: {}]   ;;  %s1737_s4 = inlined_call_operand.hbm [shape: f32[32,128], index: 4, kind: output, shape index: {}]  }
   0x1   :  { %11 = vsyncpa [#allocation3 + $0x1], 0 }
   0x2   :  { %12 = vsyncpa [#allocation6], 0 }
   0x3   :  { %13 = vsyncpa [#allocation9], 0 }
   0x4   :  { %14 = vsyncpa [#allocation4], 0 }
   0x5   :  { %16 = vsyncpa [#allocation4 + $0x1], 0  ;;  %s1439_s15 = smov 0   ;;  %s1441_s16 = smov 0  }
   0x6   :  { %s1443_s17 = smov 0   ;;  %s1445_s18 = smov 0  }
   0x7 LB: > { %s1460_s19 = sadd.s32 4294967295, %s1403_s18   ;;  %s1066_s20 = sadd.s32 4294967294, %s1403_s18   ;;  %s1403_s18 = sphi %s1445_s18, %s1748_s18   ;;  %s1399_s17 = sphi %s1443_s17, %s1747_s17   ;;  %s1395_s16 = sphi %s1441_s16, %s1746_s16   ;;  %s1391_s15 = sphi %s1439_s15, %s1745_s15  }
   0x8   : > { %p42_p0 = scmp.ne.s32.totalorder %s1395_s16, %s1391_s15  ;;  %p43_p1 = scmp.eq.s32.totalorder %s1460_s19, 0 }
   0x9   : > { %p129_p2 = scmp.eq.s32.totalorder %s1460_s19, 1  ;;  %p135_p3 = scmp.eq.s32.totalorder %s1066_s20, 1 }
   0xa   : > { %p1469_p4 = por %p43_p1, %p42_p0  ;;  %p1067_p5 = scmp.ge.s32.totalorder %s1403_s18, 1 }
   0xb   : > { %p1474_p6 = por %p135_p3, %p42_p0  ;;  %p142_p7 = scmp.lt.s32.totalorder %s1403_s18, 3 }
   0xc   : > { %s153_s25 = sshll.u32 %s1734_s1, 4  ;;  %s1405_s27 = smov [#allocation5]   ;;  %s154_s25 = int_to_ptr.hbm [resolvable:$true] %s153_s25 }
   0xd   : > { %p1482_p8 = pnand %p1067_p5, %p142_p7  ;;  %s155_s28 = sshll.u32 %s1405_s27, 4  ;;  %s156_s28 = int_to_ptr.vmem [resolvable:$true] %s155_s28 }
   0xe   : > { %s167_s6 = sshll.u32 %s1735_s2, 4  ;;  %s1406_s7 = smov 256   ;;  %s168_s6 = int_to_ptr.hbm [resolvable:$true] %s167_s6 }
   0xf   : > { %p1138_p9 = pneg %p1482_p8  ;;  %s1407_s8 = smov 16  }
  0x10   : > { %s1408_s9 = smov [#allocation7]   ;;  %s1409_s11 = smov 128  }
  0x11   : > { %p1490_p10 = pnand %p1138_p9, %p43_p1  ;;  %s169_s10 = sshll.u32 %s1408_s9, 4  ;;  %s170_s10 = int_to_ptr.vmem [resolvable:$true] %s169_s10 }
  0x12   : > { %s1410_s12 = smov 8   ;;  %s182_s20 = sshll.u32 %s1736_s3, 4  ;;  %s183_s20 = int_to_ptr.hbm [resolvable:$true] %s182_s20 }
  0x13   : > { %1141 = dma.hbm_to_vmem [thread:$0]  (!%p1490_p10), %s154_s25, 12288, %s156_s28, [#allocation6], %s1406_s7, %s1406_s7, %s1407_s8  }
  0x14   : > { %1144 = dma.hbm_to_vmem [thread:$0]  (!%p1490_p10), %s168_s6, 8192, %s170_s10, [#allocation6], %s1409_s11, %s1409_s11, %s1410_s12  }
  0x15   : > { %s1411_s23 = smov [#allocation8]   ;;  %s1511_s25 = sadd.s32 1, %s1403_s18  }
  0x16   : > { %s184_s24 = sshll.u32 %s1411_s23, 4  ;;  %s26_s27 = ssub.s32 %s1403_s18, %s1511_s25  ;;  %s185_s24 = int_to_ptr.vmem [resolvable:$true] %s184_s24 }
  0x17   : > { %1147 = dma.hbm_to_vmem [thread:$0]  (!%p1490_p10), %s183_s20, 128, %s185_s24, [#allocation9]  }
  0x18   : > { %s29_s28 = sadd.s32 1, %s1399_s17  ;;  %p27_p12 = scmp.eq.s32.totalorder %s26_s27, 0 }
  0x19   : > { %p36_p13 = scmp.ne.s32.totalorder %s1399_s17, %s1395_s16  ;;  %p37_p0 = scmp.eq.s32.totalorder %s1403_s18, 0 }
  0x1a   : > { %s1520_s30 = scalar_select %p27_p12, %s1399_s17, %s29_s28  }
  0x1b   : > { %p1524_p3 = por %p129_p2, %p36_p13  ;;  %p1159_p5 = scmp.lt.s32.totalorder %s1403_s18, 2 }
  0x1c   : > { %s195_s6 = sand.u32 1, %s1399_s17   ;;  %s1088_s7 = sshll.u32 %s1403_s18, 4 }
  0x1d   : > { %p38_p7 = por %p37_p0, %p36_p13  ;;  %s1072_s29 = sshll.u32 %s195_s6, 4 }
  0x1e   : > { %s204_s10 = scalar_lea.hbm %s1733_s0, %s1088_s7  ;;  %s199_s14 = scalar_lea.vmem [#allocation2], %s1072_s29 }
  0x1f   : > { %s205_s13 = sshll.u32 %s204_s10, 4  ;;  %s207_s20 = sshll.u32 %s199_s14, 4  ;;  %s206_s13 = int_to_ptr.hbm [resolvable:$true] %s205_s13  ;;  %s208_s20 = int_to_ptr.vmem [resolvable:$true] %s207_s20 }
  0x20   : > { %p1534_p9 = pnand %p1159_p5, %p38_p7  ;;  %s196_s24 = scalar_lea.sflag [#allocation3], %s195_s6 }
  0x21   : > { %s1299_s27 = sshra.s32 %s206_s13, 4  ;;  %s1306_s29 = scalar_lea.hbm %s1733_s0, 32  ;;  %s1300_s27 = int_to_ptr.hbm [resolvable:$true] %s1299_s27 }
  0x22   : > { %s1301_s28 = scalar_lea.hbm %s1300_s27, 16  ;;  %p1303_p10 = pneg %p1534_p9 }
  0x23   : > { %p1302_p2 = scmp.ne.s32.totalorder %s1300_s27, %s1301_s28  ;;  %p1307_p0 = scmp.lt.s32.totalorder %s1300_s27, %s1733_s0 }
  0x24   : > { %p1308_p5 = scmp.lt.s32.totalorder %s1306_s29, %s1301_s28 }
  0x25   : > { %p1304_p12 = pnand %p1303_p10, %p1302_p2 }
  0x26   : > { %p1309_p7 = por %p1308_p5, %p1307_p0 }
  0x27   : > { %p1305_p13 = pneg %p1304_p12 }
  0x29   : > { %p1310_p11 = pnand %p1309_p7, %p1305_p13 }
  0x2b   : > { %1313 = shalt.err (!%p1310_p11)
}
  0x2c   : > { %1151 = dma.hbm_to_vmem [thread:$0]  (!%p1534_p9), %s206_s13, 256, %s208_s20, %s196_s24, %s1409_s11, %s1409_s11, %s1410_s12  }
  0x2d   : > { %219 = sbr.rel (%p1482_p8) target bundleno = 319 (0x13f), region = 36  ;;  %s1554_s6 = sand.u32 (!%p1482_p8), 1, %s1395_s16  }
  0x2e   : > { %s1076_s14 = sshll.u32 (!%p1482_p8), %s1554_s6, 4  ;;  %s222_s27 = scalar_lea.sflag (!%p1482_p8), [#allocation3], %s1554_s6 }
  0x2f   : > { %s1560_s28 = scalar_lea.vmem (!%p1482_p8), [#allocation2], %s1076_s14 }
  0x32   : > { %1374 = dma.done.wait (%p1469_p4), %s222_s27, 256  }
  0x33   : > { %1376 = vsyncadd (%p1469_p4), %s222_s27, 4294967040 }
  0x34   : > { %1378 = dma.done.wait (%p43_p1), [#allocation6], 20480  }
  0x35   : > { %1380 = vsyncadd (%p43_p1), [#allocation6], 4294946816 }
  0x36   : > { %1382 = dma.done.wait (%p43_p1), [#allocation9], 128  }
  0x37   : > { %1384 = vsyncadd (%p43_p1), [#allocation9], 4294967168  ;;  %v318_v0 = vld [vmem:[#allocation7 + $0xf8] sm:$0xff]  ;;  %v405_v1 = vld [vmem:[#allocation5 + $0xf0] sm:$0xff]  ;;  %vm277_vm0 = vcmask 1042432   ;;  %vm407_vm1 = vcmask 1045504  }
  0x38   : > { %v406_v2 = vld [vmem:[#allocation5 + $0xf8] sm:$0xff]  ;;  %329 = vmatpush.msra.mxu0 %v318_v0  ;;  %415 = vmatpush.msra.mxu2 %v405_v1  ;;  %v317_v3 = vld [vmem:[#allocation7 + $0xf0] sm:$0xff]  ;;  %v403_v5 = vld [vmem:[#allocation5 + $0xe0] sm:$0xff]  ;;  %vm321_vm3 = vcmask 1046528   ;;  %vm589_vm4 = vcmask 1043456   ;;  %vm498_vm5 = vcmask 1044480  }
  0x39   : > { %v301_v4 = vld [vmem:[#allocation7 + $0x78] sm:$0xff]  ;;  %438 = vmatpush.msra.mxu3 %v406_v2  ;;  %v404_v6 = vld [vmem:[#allocation5 + $0xe8] sm:$0xff]  ;;  %v300_v8 = vld [vmem:[#allocation7 + $0x70] sm:$0xff]  ;;  %vm713_vm6 = vcmask 1041408   ;;  %vm910_vm8 = vcmask 1041409   ;;  %vm913_vm9 = vcmask 1042434  }
  0x3a   : > { %352 = vmatpush.msra.mxu1 %v301_v4  ;;  %v316_v7 = vld [vmem:[#allocation7 + $0xe8] sm:$0xff]  ;;  %330 = vmatpush.msra.mxu0 %v317_v3  ;;  %v401_v9 = vld [vmem:[#allocation5 + $0xd0] sm:$0xff]  ;;  %v402_v10 = vld [vmem:[#allocation5 + $0xd8] sm:$0xff]  ;;  %vm916_vm10 = vcmask 1043459   ;;  %vm919_vm11 = vcmask 1044484   ;;  %vm922_vm12 = vcmask 1045509  }
  0x3b   : > { %416 = vmatpush.msra.mxu2 %v403_v5  ;;  %439 = vmatpush.msra.mxu3 %v404_v6  ;;  %v315_v11 = vld [vmem:[#allocation7 + $0xe0] sm:$0xff]  ;;  %v299_v12 = vld [vmem:[#allocation7 + $0x68] sm:$0xff]  ;;  %v314_v16 = vld [vmem:[#allocation7 + $0xd8] sm:$0xff]  ;;  %vm925_vm13 = vcmask 1046534   ;;  %vm928_vm14 = vcmask 1047559   ;;  %s1089_s21 = sshll.u32 %s1460_s19, 4 }
  0x3c   : > { %353 = vmatpush.msra.mxu1 %v300_v8  ;;  %v399_v13 = vld [vmem:[#allocation5 + $0xc0] sm:$0xff]  ;;  %331 = vmatpush.msra.mxu0 %v316_v7  ;;  %v400_v14 = vld [vmem:[#allocation5 + $0xc8] sm:$0xff]  ;;  %v397_v17 = vld [vmem:[#allocation5 + $0xb0] sm:$0xff]  ;;  %s960_s12 = scalar_lea.hbm %s1737_s4, %s1089_s21  ;;  %s265_s19 = scalar_lea.vmem [#allocation10], %s1076_s14 }
  0x3d   : > { %417 = vmatpush.msra.mxu2 %v401_v9  ;;  %v298_v15 = vld [vmem:[#allocation7 + $0x60] sm:$0xff]  ;;  %440 = vmatpush.msra.mxu3 %v402_v10  ;;  %v398_v18 = vld [vmem:[#allocation5 + $0xb8] sm:$0xff]  ;;  %v313_v20 = vld [vmem:[#allocation7 + $0xd0] sm:$0xff]  ;;  %s961_s13 = sshll.u32 %s265_s19, 4  ;;  %s963_s20 = sshll.u32 %s960_s12, 4  ;;  %s962_s13 = int_to_ptr.vmem [resolvable:$true] %s961_s13  ;;  %s964_s20 = int_to_ptr.hbm [resolvable:$true] %s963_s20 }
  0x3e   : > { %354 = vmatpush.msra.mxu1 %v299_v12  ;;  %332 = vmatpush.msra.mxu0 %v315_v11  ;;  %v297_v19 = vld [vmem:[#allocation7 + $0x58] sm:$0xff]  ;;  %v395_v21 = vld [vmem:[#allocation5 + $0xa0] sm:$0xff]  ;;  %v396_v22 = vld [vmem:[#allocation5 + $0xa8] sm:$0xff]  ;;  %s949_s23 = scalar_lea.sflag [#allocation4], %s1554_s6  ;;  %s1343_s24 = sshra.s32 %s964_s20, 4  ;;  %s1344_s24 = int_to_ptr.hbm [resolvable:$true] %s1343_s24 }
  0x3f   : > { %418 = vmatpush.msra.mxu2 %v399_v13  ;;  %441 = vmatpush.msra.mxu3 %v400_v14  ;;  %v296_v23 = vld [vmem:[#allocation7 + $0x50] sm:$0xff]  ;;  %v312_v24 = vld [vmem:[#allocation7 + $0xc8] sm:$0xff]  ;;  %v394_v26 = vld [vmem:[#allocation5 + $0x98] sm:$0xff]  ;;  %s1345_s7 = scalar_lea.hbm %s1344_s24, 16  ;;  %s1349_s9 = scalar_lea.hbm %s1737_s4, 32 }
  0x40   : > { %355 = vmatpush.msra.mxu1 %v298_v15  ;;  %333 = vmatpush.msra.mxu0 %v314_v16  ;;  %v393_v25 = vld [vmem:[#allocation5 + $0x90] sm:$0xff]  ;;  %v295_v27 = vld [vmem:[#allocation7 + $0x48] sm:$0xff]  ;;  %v311_v28 = vld [vmem:[#allocation7 + $0xc0] sm:$0xff]  ;;  %p1346_p1 = scmp.ne.s32.totalorder %s1344_s24, %s1345_s7  ;;  %p1350_p11 = scmp.lt.s32.totalorder %s1344_s24, %s1737_s4 }
  0x41   : > { %419 = vmatpush.msra.mxu2 %v397_v17  ;;  %442 = vmatpush.msra.mxu3 %v398_v18  ;;  %v391_v29 = vld [vmem:[#allocation5 + $0x80] sm:$0xff]  ;;  %v392_v30 = vld [vmem:[#allocation5 + $0x88] sm:$0xff]  ;;  %v310_v32 = vld [vmem:[#allocation7 + $0xb8] sm:$0xff]  ;;  %p1351_p9 = scmp.lt.s32.totalorder %s1349_s9, %s1345_s7 }
  0x42   : > { %356 = vmatpush.msra.mxu1 %v297_v19  ;;  %334 = vmatpush.msra.mxu0 %v313_v20  ;;  %v294_v31 = vld [vmem:[#allocation7 + $0x40] sm:$0xff]  ;;  %v389_v33 = vld [vmem:[#allocation5 + $0x70] sm:$0xff]  ;;  %v390_v34 = vld [vmem:[#allocation5 + $0x78] sm:$0xff]  ;;  %p1347_p4 = pnand %p1346_p1, %p1524_p3 }
  0x43   : > { %420 = vmatpush.msra.mxu2 %v395_v21  ;;  %443 = vmatpush.msra.mxu3 %v396_v22  ;;  %v293_v35 = vld [vmem:[#allocation7 + $0x38] sm:$0xff]  ;;  %v309_v36 = vld [vmem:[#allocation7 + $0xb0] sm:$0xff]  ;;  %v387_v37 = vld [vmem:[#allocation5 + $0x60] sm:$0xff]  ;;  %p1352_p2 = por %p1351_p9, %p1350_p11 }
  0x44   : > { %357 = vmatpush.msra.mxu1 %v296_v23  ;;  %335 = vmatpush.msra.mxu0 %v312_v24  ;;  %v388_v38 = vld [vmem:[#allocation5 + $0x68] sm:$0xff]  ;;  %v292_v39 = vld [vmem:[#allocation7 + $0x30] sm:$0xff]  ;;  %v386_v42 = vld [vmem:[#allocation5 + $0x58] sm:$0xff]  ;;  %p1348_p8 = pneg %p1347_p4 }
  0x45   : > { %421 = vmatpush.msra.mxu2 %v393_v25  ;;  %444 = vmatpush.msra.mxu3 %v394_v26  ;;  %v308_v40 = vld [vmem:[#allocation7 + $0xa8] sm:$0xff]  ;;  %v385_v41 = vld [vmem:[#allocation5 + $0x50] sm:$0xff]  ;;  %v307_v44 = vld [vmem:[#allocation7 + $0xa0] sm:$0xff] }
  0x46   : > { %358 = vmatpush.msra.mxu1 %v295_v27  ;;  %336 = vmatpush.msra.mxu0 %v311_v28  ;;  %v291_v43 = vld [vmem:[#allocation7 + $0x28] sm:$0xff]  ;;  %v383_v45 = vld [vmem:[#allocation5 + $0x40] sm:$0xff]  ;;  %v306_v48 = vld [vmem:[#allocation7 + $0x98] sm:$0xff]  ;;  %p1353_p10 = pnand %p1352_p2, %p1348_p8 }
  0x47   : > { %422 = vmatpush.msra.mxu2 %v391_v29  ;;  %445 = vmatpush.msra.mxu3 %v392_v30  ;;  %v384_v46 = vld [vmem:[#allocation5 + $0x48] sm:$0xff]  ;;  %v290_v47 = vld [vmem:[#allocation7 + $0x20] sm:$0xff]  ;;  %v381_v49 = vld [vmem:[#allocation5 + $0x30] sm:$0xff] }
  0x48   : > { %359 = vmatpush.msra.mxu1 %v294_v31  ;;  %337 = vmatpush.msra.mxu0 %v310_v32  ;;  %v382_v50 = vld [vmem:[#allocation5 + $0x38] sm:$0xff]  ;;  %v305_v52 = vld [vmem:[#allocation7 + $0x90] sm:$0xff]  ;;  %v379_v53 = vld [vmem:[#allocation5 + $0x20] sm:$0xff] }
  0x49   : > { %423 = vmatpush.msra.mxu2 %v389_v33  ;;  %446 = vmatpush.msra.mxu3 %v390_v34  ;;  %v289_v51 = vld [vmem:[#allocation7 + $0x18] sm:$0xff]  ;;  %v380_v54 = vld [vmem:[#allocation5 + $0x28] sm:$0xff]  ;;  %v288_v55 = vld [vmem:[#allocation7 + $0x10] sm:$0xff] }
  0x4a   : > { %360 = vmatpush.msra.mxu1 %v293_v35  ;;  %338 = vmatpush.msra.mxu0 %v309_v36  ;;  %v304_v56 = vld [vmem:[#allocation7 + $0x88] sm:$0xff]  ;;  %v377_v57 = vld [vmem:[#allocation5 + $0x10] sm:$0xff]  ;;  %v378_v58 = vld [vmem:[#allocation5 + $0x18] sm:$0xff] }
  0x4b   : > { %424 = vmatpush.msra.mxu2 %v387_v37  ;;  %447 = vmatpush.msra.mxu3 %v388_v38  ;;  %v287_v59 = vld [vmem:[#allocation7 + $0x8] sm:$0xff]  ;;  %v303_v60 = vld [vmem:[#allocation7 + $0x80] sm:$0xff]  ;;  %v496_v63 = vld [vmem:[#allocation5 + $0x1f0] sm:$0xff] }
  0x4c   : > { %361 = vmatpush.msra.mxu1 %v292_v39  ;;  %339 = vmatpush.msra.mxu0 %v308_v40  ;;  %v375_v61 = vld [vmem:[#allocation5] sm:$0xff]  ;;  %v376_v62 = vld [vmem:[#allocation5 + $0x8] sm:$0xff]  ;;  %v587_v0 = vld [vmem:[#allocation5 + $0x2f0] sm:$0xff] }
  0x4d   : > { %425 = vmatpush.msra.mxu2 %v385_v41  ;;  %448 = vmatpush.msra.mxu3 %v386_v42  ;;  %v588_v1 = vld [vmem:[#allocation5 + $0x2f8] sm:$0xff]  ;;  %v286_v2 = vld [vmem:[#allocation7] sm:$0xff]  ;;  %v586_v8 = vld [vmem:[#allocation5 + $0x2e8] sm:$0xff] }
  0x4e   : > { %362 = vmatpush.msra.mxu1 %v291_v43  ;;  %340 = vmatpush.msra.mxu0 %v307_v44  ;;  %v494_v3 = vld [vmem:[#allocation5 + $0x1e0] sm:$0xff]  ;;  %v497_v4 = vld [vmem:[#allocation5 + $0x1f8] sm:$0xff]  ;;  %v492_v9 = vld [vmem:[#allocation5 + $0x1d0] sm:$0xff] }
  0x4f   : > { %426 = vmatpush.msra.mxu2 %v383_v45  ;;  %449 = vmatpush.msra.mxu3 %v384_v46  ;;  %v585_v5 = vld [vmem:[#allocation5 + $0x2e0] sm:$0xff]  ;;  %v1576_v7 = vld [vmem:[%s1560_s28 + $0x8] sm:$0xff]  ;;  %v583_v11 = vld [vmem:[#allocation5 + $0x2d0] sm:$0xff] }
  0x50   : > { %363 = vmatpush.msra.mxu1 %v290_v47  ;;  %341 = vmatpush.msra.mxu0 %v306_v48  ;;  %v273_v6 = vld [vmem:[%s1560_s28] sm:$0xff]  ;;  %v495_v10 = vld [vmem:[#allocation5 + $0x1e8] sm:$0xff]  ;;  %v584_v12 = vld [vmem:[#allocation5 + $0x2d8] sm:$0xff]  ;;  %v279_v15 = vrot.slane %v1576_v7, 5 }
  0x51   : > { %427 = vmatpush.msra.mxu2 %v381_v49  ;;  %450 = vmatpush.msra.mxu3 %v382_v50  ;;  %v490_v13 = vld [vmem:[#allocation5 + $0x1c0] sm:$0xff]  ;;  %v1578_v14 = vrot.slane %v273_v6, 5  ;;  %v493_v16 = vld [vmem:[#allocation5 + $0x1d8] sm:$0xff]  ;;  %v582_v18 = vld [vmem:[#allocation5 + $0x2c8] sm:$0xff] }
  0x52   : > { %364 = vmatpush.msra.mxu1 %v289_v51  ;;  %342 = vmatpush.msra.mxu0 %v305_v52  ;;  %v581_v17 = vld [vmem:[#allocation5 + $0x2c0] sm:$0xff]  ;;  %v488_v19 = vld [vmem:[#allocation5 + $0x1b0] sm:$0xff]  ;;  %v491_v20 = vld [vmem:[#allocation5 + $0x1c8] sm:$0xff]  ;;  %v1599_v49 = vsel %vm277_vm0, %v279_v15, 0.0 }
  0x53   : > { %428 = vmatpush.msra.mxu2 %v379_v53  ;;  %451 = vmatpush.msra.mxu3 %v380_v54  ;;  %v579_v21 = vld [vmem:[#allocation5 + $0x2b0] sm:$0xff]  ;;  %v580_v22 = vld [vmem:[#allocation5 + $0x2b8] sm:$0xff]  ;;  %v486_v23 = vld [vmem:[#allocation5 + $0x1a0] sm:$0xff]  ;;  %v1585_v24 = vsel %vm277_vm0, %v1578_v14, %v279_v15  ;;  %v1589_v25 = vsel %vm277_vm0, 0.0, %v1578_v14 }
  0x54   : > { %365 = vmatpush.msra.mxu1 %v288_v55  ;;  %343 = vmatpush.msra.mxu0 %v304_v56  ;;  %v489_v26 = vld [vmem:[#allocation5 + $0x1b8] sm:$0xff]  ;;  %v577_v27 = vld [vmem:[#allocation5 + $0x2a0] sm:$0xff]  ;;  %v578_v28 = vld [vmem:[#allocation5 + $0x2a8] sm:$0xff]  ;;  %v408_v32 = vrot.slane %v1589_v25, 2  ;;  %v409_v33 = vrot.slane %v1585_v24, 2  ;;  %v322_v47 = vrot.slane %v1589_v25, 1 }
  0x55   : > { %429 = vmatpush.msra.mxu2 %v377_v57  ;;  %452 = vmatpush.msra.mxu3 %v378_v58  ;;  %v484_v29 = vld [vmem:[#allocation5 + $0x190] sm:$0xff]  ;;  %v487_v30 = vld [vmem:[#allocation5 + $0x1a8] sm:$0xff]  ;;  %v576_v34 = vld [vmem:[#allocation5 + $0x298] sm:$0xff]  ;;  %v323_v48 = vrot.slane %v1585_v24, 1  ;;  %v411_v55 = vrot.slane %v1599_v49, 2 }
  0x56   : > { %366 = vmatpush.msra.mxu1 %v287_v59  ;;  %344 = vmatpush.msra.mxu0 %v303_v60  ;;  %v575_v31 = vld [vmem:[#allocation5 + $0x290] sm:$0xff]  ;;  %v482_v35 = vld [vmem:[#allocation5 + $0x180] sm:$0xff]  ;;  %v485_v36 = vld [vmem:[#allocation5 + $0x198] sm:$0xff]  ;;  %v410_v41 = vsel %vm407_vm1, %v408_v32, %v409_v33 }
  0x57   : > { %430 = vmatpush.msra.mxu2 %v375_v61  ;;  %453 = vmatpush.msra.mxu3 %v376_v62  ;;  %v573_v37 = vld [vmem:[#allocation5 + $0x280] sm:$0xff]  ;;  %v574_v38 = vld [vmem:[#allocation5 + $0x288] sm:$0xff]  ;;  %v480_v39 = vld [vmem:[#allocation5 + $0x170] sm:$0xff]  ;;  %v324_v56 = vsel %vm321_vm3, %v322_v47, %v323_v48  ;;  %v412_v62 = vsel %vm407_vm1, %v409_v33, %v411_v55 }
  0x58   : > { %506 = vmatpush.msrb.mxu0 %v496_v63  ;;  %367 = vmatpush.msra.mxu1 %v286_v2  ;;  %v483_v40 = vld [vmem:[#allocation5 + $0x188] sm:$0xff]  ;;  %v571_v42 = vld [vmem:[#allocation5 + $0x270] sm:$0xff]  ;;  %v572_v43 = vld [vmem:[#allocation5 + $0x278] sm:$0xff] }
  0x59   : > { %597 = vmatpush.msrb.mxu2 %v587_v0  ;;  %620 = vmatpush.msrb.mxu3 %v588_v1  ;;  %v478_v44 = vld [vmem:[#allocation5 + $0x160] sm:$0xff]  ;;  %v481_v45 = vld [vmem:[#allocation5 + $0x178] sm:$0xff]  ;;  %v570_v50 = vld [vmem:[#allocation5 + $0x268] sm:$0xff] }
  0x5a   : > { %507 = vmatpush.msrb.mxu0 %v494_v3  ;;  %529 = vmatpush.msrb.mxu1 %v497_v4  ;;  %v569_v46 = vld [vmem:[#allocation5 + $0x260] sm:$0xff]  ;;  %vm1081_vm2 = vmneg %vm277_vm0  ;;  %v476_v51 = vld [vmem:[#allocation5 + $0x150] sm:$0xff] }
  0x5b   : > { %598 = vmatpush.msrb.mxu2 %v585_v5  ;;  %621 = vmatpush.msrb.mxu3 %v586_v8  ;;  %v479_v52 = vld [vmem:[#allocation5 + $0x168] sm:$0xff]  ;;  %v567_v53 = vld [vmem:[#allocation5 + $0x250] sm:$0xff]  ;;  %v568_v54 = vld [vmem:[#allocation5 + $0x258] sm:$0xff]  ;;  %v325_v5 = vrot.slane %v1599_v49, 1 }
  0x5c   : > { %508 = vmatpush.msrb.mxu0 %v492_v9  ;;  %530 = vmatpush.msrb.mxu1 %v495_v10  ;;  %v477_v57 = vld [vmem:[#allocation5 + $0x158] sm:$0xff]  ;;  %v474_v58 = vld [vmem:[#allocation5 + $0x140] sm:$0xff]  ;;  %v566_v60 = vld [vmem:[#allocation5 + $0x248] sm:$0xff] }
  0x5d   : > { %599 = vmatpush.msrb.mxu2 %v583_v11  ;;  %622 = vmatpush.msrb.mxu3 %v584_v12  ;;  %v565_v59 = vld [vmem:[#allocation5 + $0x240] sm:$0xff]  ;;  %v475_v61 = vld [vmem:[#allocation5 + $0x148] sm:$0xff]  ;;  %v472_v63 = vld [vmem:[#allocation5 + $0x130] sm:$0xff]  ;;  %v590_v11 = vrot.slane %v1589_v25, 4  ;;  %v591_v12 = vrot.slane %v1585_v24, 4 }
  0x5e   : > { %509 = vmatpush.msrb.mxu0 %v490_v13  ;;  %531 = vmatpush.msrb.mxu1 %v493_v16  ;;  %v563_v0 = vld [vmem:[#allocation5 + $0x230] sm:$0xff]  ;;  %v564_v1 = vld [vmem:[#allocation5 + $0x238] sm:$0xff]  ;;  %v470_v2 = vld [vmem:[#allocation5 + $0x120] sm:$0xff]  ;;  %v326_v13 = vsel %vm321_vm3, %v323_v48, %v325_v5 }
  0x5f   : > { %600 = vmatpush.msrb.mxu2 %v581_v17  ;;  %623 = vmatpush.msrb.mxu3 %v582_v18  ;;  %v473_v3 = vld [vmem:[#allocation5 + $0x138] sm:$0xff]  ;;  %v561_v4 = vld [vmem:[#allocation5 + $0x220] sm:$0xff]  ;;  %v562_v6 = vld [vmem:[#allocation5 + $0x228] sm:$0xff] }
  0x60   : > { %510 = vmatpush.msrb.mxu0 %v488_v19  ;;  %532 = vmatpush.msrb.mxu1 %v491_v20  ;;  %v468_v7 = vld [vmem:[#allocation5 + $0x110] sm:$0xff]  ;;  %v471_v8 = vld [vmem:[#allocation5 + $0x128] sm:$0xff]  ;;  %v560_v10 = vld [vmem:[#allocation5 + $0x218] sm:$0xff]  ;;  %v592_v19 = vsel %vm589_vm4, %v590_v11, %v591_v12  ;;  %v499_v20 = vrot.slane %v1589_v25, 3 }
  0x61   : > { %601 = vmatpush.msrb.mxu2 %v579_v21  ;;  %624 = vmatpush.msrb.mxu3 %v580_v22  ;;  %v559_v9 = vld [vmem:[#allocation5 + $0x210] sm:$0xff]  ;;  %v466_v15 = vld [vmem:[#allocation5 + $0x100] sm:$0xff]  ;;  %v558_v17 = vld [vmem:[#allocation5 + $0x208] sm:$0xff]  ;;  %v500_v21 = vrot.slane %v1585_v24, 3 }
  0x62   : > { %511 = vmatpush.msrb.mxu0 %v486_v23  ;;  %533 = vmatpush.msrb.mxu1 %v489_v26  ;;  %v557_v16 = vld [vmem:[#allocation5 + $0x200] sm:$0xff]  ;;  %v663_v18 = vld [vmem:[#allocation7 + $0x178] sm:$0xff]  ;;  %v467_v22 = vld [vmem:[#allocation5 + $0x108] sm:$0xff] }
  0x63   : > { %602 = vmatpush.msrb.mxu2 %v577_v27  ;;  %625 = vmatpush.msrb.mxu3 %v578_v28  ;;  %v662_v23 = vld [vmem:[#allocation7 + $0x170] sm:$0xff]  ;;  %v712_v26 = vld [vmem:[#allocation7 + $0x1f8] sm:$0xff]  ;;  %v501_v27 = vsel %vm498_vm5, %v499_v20, %v500_v21  ;;  %v661_v28 = vld [vmem:[#allocation7 + $0x168] sm:$0xff] }
  0x64   : > { %512 = vmatpush.msrb.mxu0 %v484_v29  ;;  %534 = vmatpush.msrb.mxu1 %v487_v30  ;;  %v711_v29 = vld [vmem:[#allocation7 + $0x1f0] sm:$0xff]  ;;  %v593_v30 = vrot.slane %v1599_v49, 4  ;;  %v710_v32 = vld [vmem:[#allocation7 + $0x1e8] sm:$0xff]  ;;  %v704_v47 = vld [vmem:[#allocation7 + $0x1b8] sm:$0xff] }
  0x65   : > { %603 = vmatpush.msrb.mxu2 %v575_v31  ;;  %626 = vmatpush.msrb.mxu3 %v576_v34  ;;  %v660_v31 = vld [vmem:[#allocation7 + $0x160] sm:$0xff]  ;;  %v659_v34 = vld [vmem:[#allocation7 + $0x158] sm:$0xff]  ;;  %v653_v48 = vld [vmem:[#allocation7 + $0x128] sm:$0xff] }
  0x66   : > { %513 = vmatpush.msrb.mxu0 %v482_v35  ;;  %535 = vmatpush.msrb.mxu1 %v485_v36  ;;  %v594_v33 = vsel %vm589_vm4, %v591_v12, %v593_v30  ;;  %v709_v35 = vld [vmem:[#allocation7 + $0x1e0] sm:$0xff]  ;;  %v502_v36 = vrot.slane %v1599_v49, 3  ;;  %v650_v55 = vld [vmem:[#allocation7 + $0x110] sm:$0xff] }
  0x67   : > { %604 = vmatpush.msrb.mxu2 %v573_v37  ;;  %627 = vmatpush.msrb.mxu3 %v574_v38  ;;  %v658_v37 = vld [vmem:[#allocation7 + $0x150] sm:$0xff]  ;;  %v708_v38 = vld [vmem:[#allocation7 + $0x1d8] sm:$0xff]  ;;  %v697_v5 = vld [vmem:[#allocation7 + $0x180] sm:$0xff] }
  0x68   : > { %514 = vmatpush.msrb.mxu0 %v480_v39  ;;  %454 = vmatmul.f32.vlgmr.msra.gmra.mxu3 %v410_v41  ;;  %v503_v39 = vsel %vm498_vm5, %v500_v21, %v502_v36 }
  0x69   : > { %536 = vmatpush.msrb.mxu1 %v483_v40  ;;  %605 = vmatpush.msrb.mxu2 %v571_v42  ;;  %v657_v40 = vld [vmem:[#allocation7 + $0x148] sm:$0xff]  ;;  %v656_v42 = vld [vmem:[#allocation7 + $0x140] sm:$0xff] }
  0x6a   : > { %628 = vmatpush.msrb.mxu3 %v572_v43  ;;  %431 = vmatmul.f32.vlgmr.msra.gmra.mxu2 %v410_v41  ;;  %v707_v41 = vld [vmem:[#allocation7 + $0x1d0] sm:$0xff]  ;;  %v706_v43 = vld [vmem:[#allocation7 + $0x1c8] sm:$0xff] }
  0x6b   : > { %515 = vmatpush.msrb.mxu0 %v478_v44  ;;  %537 = vmatpush.msrb.mxu1 %v481_v45  ;;  %v655_v44 = vld [vmem:[#allocation7 + $0x138] sm:$0xff]  ;;  %v705_v45 = vld [vmem:[#allocation7 + $0x1c0] sm:$0xff] }
  0x6c   : > { %606 = vmatpush.msrb.mxu2 %v569_v46  ;;  %629 = vmatpush.msrb.mxu3 %v570_v50  ;;  %v654_v46 = vld [vmem:[#allocation7 + $0x130] sm:$0xff] }
  0x6d   : > { %1082 = vmatmul.msk.f32.vlgmr.msra.gmra.mxu1 %vm1081_vm2, %v1578_v14  ;;  %516 = vmatpush.msrb.mxu0 %v476_v51  ;;  %v469_v14 = vld [vmem:[#allocation5 + $0x118] sm:$0xff]  ;;  %v703_v50 = vld [vmem:[#allocation7 + $0x1b0] sm:$0xff]  ;;  %v652_v51 = vld [vmem:[#allocation7 + $0x120] sm:$0xff] }
  0x6e   : > { %538 = vmatpush.msrb.mxu1 %v479_v52  ;;  %607 = vmatpush.msrb.mxu2 %v567_v53  ;;  %v702_v52 = vld [vmem:[#allocation7 + $0x1a8] sm:$0xff]  ;;  %v651_v53 = vld [vmem:[#allocation7 + $0x118] sm:$0xff] }
  0x6f   : > { %630 = vmatpush.msrb.mxu3 %v568_v54  ;;  %345 = vmatmul.f32.vlgmr.msra.gmra.mxu0 %v324_v56  ;;  %v701_v54 = vld [vmem:[#allocation7 + $0x1a0] sm:$0xff]  ;;  %v700_v56 = vld [vmem:[#allocation7 + $0x198] sm:$0xff] }
  0x70   : > { %539 = vmatpush.msrb.mxu1 %v477_v57  ;;  %517 = vmatpush.msrb.mxu0 %v474_v58  ;;  %v649_v57 = vld [vmem:[#allocation7 + $0x108] sm:$0xff]  ;;  %v664_v58 = vrot.slane %v1589_v25, 5 }
  0x71   : > { %608 = vmatpush.msrb.mxu2 %v565_v59  ;;  %631 = vmatpush.msrb.mxu3 %v566_v60  ;;  %v665_v59 = vrot.slane %v1585_v24, 5  ;;  %v667_v60 = vrot.slane %v1599_v49, 5 }
  0x72   : > { %540 = vmatpush.msrb.mxu1 %v475_v61  ;;  %457 = vmatmul.f32.gmra.mxu3 %v412_v62  ;;  %v699_v61 = vld [vmem:[#allocation7 + $0x190] sm:$0xff] }
  0x73   : > { %518 = vmatpush.msrb.mxu0 %v472_v63  ;;  %609 = vmatpush.msrb.mxu2 %v563_v0  ;;  %v714_v63 = vrot.slane %v1589_v25, 6  ;;  %v715_v0 = vrot.slane %v1585_v24, 6 }
  0x74   : > { %632 = vmatpush.msrb.mxu3 %v564_v1  ;;  %434 = vmatmul.f32.gmra.mxu2 %v412_v62  ;;  %v648_v62 = vld [vmem:[#allocation7 + $0x100] sm:$0xff]  ;;  %v717_v1 = vrot.slane %v1599_v49, 6 }
  0x75   : > { %519 = vmatpush.msrb.mxu0 %v470_v2  ;;  %541 = vmatpush.msrb.mxu1 %v473_v3  ;;  %v698_v2 = vld [vmem:[#allocation7 + $0x188] sm:$0xff]  ;;  %v666_v3 = vsel %vm277_vm0, %v664_v58, %v665_v59  ;;  %v716_v25 = vsel %vm713_vm6, %v714_v63, %v715_v0 }
  0x76   : > { %610 = vmatpush.msrb.mxu2 %v561_v4  ;;  %633 = vmatpush.msrb.mxu3 %v562_v6  ;;  %v668_v4 = vsel %vm277_vm0, %v665_v59, %v667_v60  ;;  %v718_v6 = vsel %vm713_vm6, %v715_v0, %v717_v1  ;;  %v1207_v59 = vld [vmem:[#allocation8 + $0x3] ss:$0 sm:$0xff] }
  0x77   : > { %371 = vmatmul.f32.gmra.mxu1 %v1585_v24  ;;  %520 = vmatpush.msrb.mxu0 %v468_v7 }
  0x78   : > { %542 = vmatpush.msrb.mxu1 %v471_v8  ;;  %611 = vmatpush.msrb.mxu2 %v559_v9 }
  0x79   : > { %634 = vmatpush.msrb.mxu3 %v560_v10  ;;  %348 = vmatmul.f32.gmra.mxu0 %v326_v13 }
  0x7a   : > { %543 = vmatpush.msrb.mxu1 %v469_v14  ;;  %521 = vmatpush.msrb.mxu0 %v466_v15 }
  0x7b   : > { %612 = vmatpush.msrb.mxu2 %v557_v16  ;;  %635 = vmatpush.msrb.mxu3 %v558_v17  ;;  %v1205_v17 = vld [vmem:[#allocation8] ss:$0 sm:$0xff] }
  0x7c   : > { %671 = vmatpush.msra.mxu0 %v663_v18  ;;  %636 = vmatmul.f32.vlgmr.msrb.gmra.mxu3 %v592_v19 }
  0x7d   : > { %1090 = vmatpush.msra.mxu2 %v663_v18  ;;  %544 = vmatpush.msrb.mxu1 %v467_v22  ;;  %v1206_v22 = vld [vmem:[#allocation8 + $0x1] ss:$0 sm:$0xff] }
  0x7e   : > { %672 = vmatpush.msra.mxu0 %v662_v23  ;;  %1106 = vmatpush.msra.mxu3 %v712_v26 }
  0x7f   : > { %1091 = vmatpush.msra.mxu2 %v662_v23  ;;  %721 = vmatpush.msra.mxu1 %v712_v26 }
  0x80   : > { %613 = vmatmul.f32.vlgmr.msrb.gmra.mxu2 %v592_v19  ;;  %545 = vmatmul.f32.vlgmr.msrb.gmra.mxu1 %v501_v27 }
  0x81   : > { %673 = vmatpush.msra.mxu0 %v661_v28  ;;  %1092 = vmatpush.msra.mxu2 %v661_v28 }
  0x82   : > { %722 = vmatpush.msra.mxu1 %v711_v29  ;;  %1107 = vmatpush.msra.mxu3 %v711_v29 }
  0x83   : > { %674 = vmatpush.msra.mxu0 %v660_v31  ;;  %1093 = vmatpush.msra.mxu2 %v660_v31 }
  0x84   : > { %723 = vmatpush.msra.mxu1 %v710_v32  ;;  %1108 = vmatpush.msra.mxu3 %v710_v32 }
  0x85   : > { %522 = vmatmul.f32.vlgmr.msrb.gmra.mxu0 %v501_v27  ;;  %639 = vmatmul.f32.gmra.mxu3 %v594_v33 }
  0x86   : > { %675 = vmatpush.msra.mxu0 %v659_v34  ;;  %1094 = vmatpush.msra.mxu2 %v659_v34  ;;  %v1633_v34 = vld [vmem:[#allocation8 + $0x2] sm:$0x1] }
  0x87   : > { %724 = vmatpush.msra.mxu1 %v709_v35  ;;  %1109 = vmatpush.msra.mxu3 %v709_v35  ;;  %vm746_vm7 = vcmp.gt.f32.partialorder %v1633_v34, 0.0 }
  0x88   : > { %676 = vmatpush.msra.mxu0 %v658_v37  ;;  %1095 = vmatpush.msra.mxu2 %v658_v37 }
  0x89   : > { %725 = vmatpush.msra.mxu1 %v708_v38  ;;  %1110 = vmatpush.msra.mxu3 %v708_v38 }
  0x8a   : > { %616 = vmatmul.f32.gmra.mxu2 %v594_v33  ;;  %548 = vmatmul.f32.gmra.mxu1 %v503_v39 }
  0x8b   : > { %677 = vmatpush.msra.mxu0 %v657_v40  ;;  %1096 = vmatpush.msra.mxu2 %v657_v40 }
  0x8c   : > { %726 = vmatpush.msra.mxu1 %v707_v41  ;;  %1111 = vmatpush.msra.mxu3 %v707_v41 }
  0x8d   : > { %678 = vmatpush.msra.mxu0 %v656_v42  ;;  %1097 = vmatpush.msra.mxu2 %v656_v42 }
  0x8e   : > { %727 = vmatpush.msra.mxu1 %v706_v43  ;;  %1112 = vmatpush.msra.mxu3 %v706_v43 }
  0x8f   : > { %525 = vmatmul.f32.gmra.mxu0 %v503_v39  ;;  %1098 = vmatpush.msra.mxu2 %v655_v44 }
  0x90   : > { %679 = vmatpush.msra.mxu0 %v655_v44  ;;  %728 = vmatpush.msra.mxu1 %v705_v45 }
  0x91   : > { %1113 = vmatpush.msra.mxu3 %v705_v45  ;;  %1099 = vmatpush.msra.mxu2 %v654_v46 }
  0x92   : > { %680 = vmatpush.msra.mxu0 %v654_v46  ;;  %729 = vmatpush.msra.mxu1 %v704_v47 }
  0x93   : > { %1114 = vmatpush.msra.mxu3 %v704_v47  ;;  %1100 = vmatpush.msra.mxu2 %v653_v48 }
  0x94   : > { %681 = vmatpush.msra.mxu0 %v653_v48  ;;  %730 = vmatpush.msra.mxu1 %v703_v50 }
  0x95   : > { %1115 = vmatpush.msra.mxu3 %v703_v50  ;;  %1101 = vmatpush.msra.mxu2 %v652_v51 }
  0x96   : > { %682 = vmatpush.msra.mxu0 %v652_v51  ;;  %731 = vmatpush.msra.mxu1 %v702_v52 }
  0x97   : > { %1116 = vmatpush.msra.mxu3 %v702_v52  ;;  %1102 = vmatpush.msra.mxu2 %v651_v53 }
  0x98   : > { %683 = vmatpush.msra.mxu0 %v651_v53  ;;  %732 = vmatpush.msra.mxu1 %v701_v54 }
  0x99   : > { %1117 = vmatpush.msra.mxu3 %v701_v54  ;;  %1103 = vmatpush.msra.mxu2 %v650_v55 }
  0x9a   : > { %684 = vmatpush.msra.mxu0 %v650_v55  ;;  %733 = vmatpush.msra.mxu1 %v700_v56 }
  0x9b   : > { %1118 = vmatpush.msra.mxu3 %v700_v56  ;;  %1104 = vmatpush.msra.mxu2 %v649_v57 }
  0x9c   : > { %685 = vmatpush.msra.mxu0 %v649_v57  ;;  %734 = vmatpush.msra.mxu1 %v699_v61 }
  0x9d   : > { %1119 = vmatpush.msra.mxu3 %v699_v61  ;;  %1105 = vmatpush.msra.mxu2 %v648_v62 }
  0x9e   : > { %686 = vmatpush.msra.mxu0 %v648_v62  ;;  %735 = vmatpush.msra.mxu1 %v698_v2 }
  0x9f   : > { %1120 = vmatpush.msra.mxu3 %v698_v2  ;;  %687 = vmatmul.f32.vlgmr.msra.gmra.mxu0 %v666_v3  ;;  %v1208_v3 = vld [vmem:[#allocation8 + $0x4] ss:$0 sm:$0xff] }
  0xa0   : > { %690 = vmatmul.f32.vlgmr.msra.gmra.mxu2 %v668_v4  ;;  %736 = vmatpush.msra.mxu1 %v697_v5 }
  0xa1   : > { %1121 = vmatpush.msra.mxu3 %v697_v5  ;;  %737 = vmatmul.f32.vlgmr.msra.gmra.mxu1 %v716_v25 }
  0xa2   : > { %740 = vmatmul.f32.vlgmr.msra.gmra.mxu3 %v718_v6 }
  0xea   : > { %v369_v24 = vpop.f32.mrf.mxu1 }
  0xeb   : > { %v455_v49 = vpop.f32.mrf.mxu3 }
  0xec   : > { %v346_v7 = vpop.f32.mrf.mxu0 }
  0xed   : > { %v432_v10 = vpop.f32.mrf.mxu2  ;;  %v370_v26 = vadd.f32 %v369_v24, %v346_v7 }
  0xef   : > { %v461_v30 = vadd.f32 %v432_v10, %v370_v26 }
  0xf4   : > { %v372_v8 = vpop.f32.mrf.mxu1 }
  0xf5   : > { %v458_v9 = vpop.f32.mrf.mxu3 }
  0xf6   : > { %v349_v11 = vpop.f32.mrf.mxu0 }
  0xf7   : > { %v435_v14 = vpop.f32.mrf.mxu2  ;;  %v373_v32 = vadd.f32 %v372_v8, %v349_v11 }
  0xf9   : > { %v462_v37 = vadd.f32 %v435_v14, %v373_v32 }
  0xfd   : > { %v546_v12 = vpop.f32.mrf.mxu1 }
  0xfe   : > { %v554_v15 = vadd.f32 %v546_v12, %v455_v49 }
  0xff   : > { %v637_v13 = vpop.f32.mrf.mxu3 }
 0x100   : > { %v1627_v16 = vadd.f32 %v637_v13, %v554_v15 }
 0x102   : > { %v523_v18 = vpop.f32.mrf.mxu0  ;;  %v748_v21 = vmul.f32 %v1205_v17, %v1627_v16  ;;  %v791_v38 = vrot.slane %v1627_v16, 1  ;;  %v792_v40 = vrot.slane %v1627_v16, 2  ;;  %v793_v45 = vrot.slane %v1627_v16, 3 }
 0x103   : > { %v614_v27 = vpop.f32.mrf.mxu2  ;;  %v552_v36 = vadd.f32 %v523_v18, %v461_v30  ;;  %v794_v52 = vrot.slane %v1627_v16, 4  ;;  %v795_v53 = vrot.slane %v1627_v16, 5  ;;  %v796_v54 = vrot.slane %v1627_v16, 6 }
 0x104   : > { %v751_v29 = vadd.f32 %v1206_v22, %v748_v21  ;;  %v797_v55 = vrot.slane %v1627_v16, 7 }
 0x105   : > { %v643_v46 = vadd.f32 %v614_v27, %v552_v36 }
 0x106   : > { %v753_v35 = vmax.f32 %v751_v29, 0.0 }
 0x107   : > { %v549_v19 = vpop.f32.mrf.mxu1 }
 0x108   : > { %v555_v20 = vadd.f32 %v549_v19, %v458_v9  ;;  %v640_v23 = vpop.f32.mrf.mxu3  ;;  %v759_v42 = vrot.slane %v753_v35, 1  ;;  %v760_v43 = vrot.slane %v753_v35, 2  ;;  %v761_v44 = vrot.slane %v753_v35, 3 }
 0x109   : > { %v762_v47 = vrot.slane %v753_v35, 4  ;;  %v763_v48 = vrot.slane %v753_v35, 5  ;;  %v764_v50 = vrot.slane %v753_v35, 6  ;;  %v765_v60 = vrot.slane %v753_v35, 7 }
 0x10a   : > { %v1630_v28 = vadd.f32 %v640_v23, %v555_v20  ;;  %v821_v62 = vsel %vm746_vm7, %v753_v35, %v1627_v16  ;;  %v822_v63 = vsel %vm746_vm7, %v759_v42, %v791_v38  ;;  %v823_v0 = vsel %vm746_vm7, %v760_v43, %v792_v40 }
 0x10b   : > { %v824_v1 = vsel %vm746_vm7, %v761_v44, %v793_v45  ;;  %v825_v4 = vsel %vm746_vm7, %v762_v47, %v794_v52  ;;  %v826_v5 = vsel %vm746_vm7, %v763_v48, %v795_v53  ;;  %v827_v25 = vsel %vm746_vm7, %v764_v50, %v796_v54 }
 0x10c   : > { %v526_v31 = vpop.f32.mrf.mxu0  ;;  %v749_v33 = vmul.f32 %v1205_v17, %v1630_v28  ;;  %v798_v6 = vrot.slane %v1630_v28, 1  ;;  %v799_v24 = vrot.slane %v1630_v28, 2  ;;  %v800_v49 = vrot.slane %v1630_v28, 3 }
 0x10d   : > { %v617_v41 = vpop.f32.mrf.mxu2  ;;  %v553_v57 = vadd.f32 %v526_v31, %v462_v37  ;;  %v801_v7 = vrot.slane %v1630_v28, 4  ;;  %v802_v19 = vrot.slane %v1630_v28, 5  ;;  %v803_v20 = vrot.slane %v1630_v28, 6 }
 0x10e   : > { %v752_v39 = vadd.f32 %v1206_v22, %v749_v33  ;;  %v804_v23 = vrot.slane %v1630_v28, 7  ;;  %v828_v26 = vsel %vm746_vm7, %v765_v60, %v797_v55 }
 0x10f   : > { %v644_v8 = vadd.f32 %v617_v41, %v553_v57 }
 0x110   : > { %v754_v56 = vmax.f32 %v752_v39, 0.0 }
 0x112   : > { %v766_v10 = vrot.slane %v754_v56, 1  ;;  %v767_v11 = vrot.slane %v754_v56, 2  ;;  %v768_v13 = vrot.slane %v754_v56, 3  ;;  %v769_v14 = vrot.slane %v754_v56, 4 }
 0x113   : > { %v770_v15 = vrot.slane %v754_v56, 5  ;;  %v771_v16 = vrot.slane %v754_v56, 6  ;;  %v772_v22 = vrot.slane %v754_v56, 7  ;;  %v829_v27 = vsel %vm746_vm7, %v754_v56, %v1630_v28 }
 0x114   : > { %v830_v31 = vsel %vm746_vm7, %v766_v10, %v798_v6  ;;  %v831_v32 = vsel %vm746_vm7, %v767_v11, %v799_v24  ;;  %v832_v33 = vsel %vm746_vm7, %v768_v13, %v800_v49  ;;  %v833_v35 = vsel %vm746_vm7, %v769_v14, %v801_v7 }
 0x115   : > { %v834_v36 = vsel %vm746_vm7, %v770_v15, %v802_v19  ;;  %v835_v28 = vsel %vm746_vm7, %v771_v16, %v803_v20  ;;  %v836_v41 = vsel %vm746_vm7, %v772_v22, %v804_v23 }
 0x11c   : > { %v688_v51 = vpop.f32.mrf.mxu0 }
 0x11d   : > { %v694_v58 = vadd.f32 %v688_v51, %v643_v46 }
 0x11e   : > { %v738_v61 = vpop.f32.mrf.mxu1 }
 0x11f   : > { %v744_v2 = vadd.f32 %v738_v61, %v694_v58 }
 0x121   : > { %v838_v9 = vmul.f32 %v1207_v59, %v744_v2 }
 0x123   : > { %v691_v12 = vpop.f32.mrf.mxu2  ;;  %v841_v17 = vadd.f32 %v1208_v3, %v838_v9 }
 0x124   : > { %v695_v18 = vadd.f32 %v691_v12, %v644_v8 }
 0x125   : > { %v741_v21 = vpop.f32.mrf.mxu3  ;;  %v843_v29 = vmax.f32 %v841_v17, 0.0 }
 0x126   : > { %v745_v30 = vadd.f32 %v741_v21, %v695_v18 }
 0x127   : > { %v847_v37 = vrot.slane %v843_v29, 1  ;;  %v848_v39 = vrot.slane %v843_v29, 2  ;;  %v849_v40 = vrot.slane %v843_v29, 3  ;;  %v850_v42 = vrot.slane %v843_v29, 4 }
 0x128   : > { %v839_v38 = vmul.f32 %v1207_v59, %v745_v30  ;;  %v851_v43 = vrot.slane %v843_v29, 5  ;;  %v852_v44 = vrot.slane %v843_v29, 6  ;;  %v853_v48 = vrot.slane %v843_v29, 7 }
 0x129   : > { %v878_v46 = vadd.f32 %v847_v37, %v822_v63  ;;  %v879_v47 = vadd.f32 %v848_v39, %v823_v0  ;;  %v880_v50 = vadd.f32 %v849_v40, %v824_v1  ;;  %v877_v52 = vadd.f32 %v843_v29, %v821_v62 }
 0x12a   : > { %v842_v45 = vadd.f32 %v1208_v3, %v839_v38  ;;  %v881_v53 = vadd.f32 %v850_v42, %v825_v4  ;;  %v882_v54 = vadd.f32 %v851_v43, %v826_v5  ;;  %v883_v55 = vadd.f32 %v852_v44, %v827_v25 }
 0x12b   : > { %v909_v34 = vrot.slane %v878_v46, 7  ;;  %v912_v56 = vrot.slane %v879_v47, 6  ;;  %v884_v0 = vadd.f32 %v853_v48, %v828_v26  ;;  %v915_v2 = vrot.slane %v880_v50, 5 }
 0x12c   : > { %v844_v51 = vmax.f32 %v842_v45, 0.0  ;;  %v918_v25 = vrot.slane %v881_v53, 4  ;;  %v921_v12 = vrot.slane %v882_v54, 3  ;;  %v924_v13 = vrot.slane %v883_v55, 2 }
 0x12d   : > { %v911_v5 = vsel %vm910_vm8, %v909_v34, %v877_v52  ;;  %v927_v19 = vrot.slane %v884_v0, 1 }
 0x12e   : > { %v854_v57 = vrot.slane %v844_v51, 1  ;;  %v855_v58 = vrot.slane %v844_v51, 2  ;;  %v856_v59 = vrot.slane %v844_v51, 3  ;;  %v857_v60 = vrot.slane %v844_v51, 4 }
 0x12f   : > { %v858_v61 = vrot.slane %v844_v51, 5  ;;  %v859_v63 = vrot.slane %v844_v51, 6  ;;  %v860_v1 = vrot.slane %v844_v51, 7  ;;  %v885_v62 = vadd.f32 %v844_v51, %v829_v27 }
 0x130   : > { %v886_v3 = vadd.f32 %v854_v57, %v830_v31  ;;  %v887_v6 = vadd.f32 %v855_v58, %v831_v32  ;;  %v888_v24 = vadd.f32 %v856_v59, %v832_v33  ;;  %v889_v4 = vadd.f32 %v857_v60, %v833_v35 }
 0x131   : > { %v890_v49 = vadd.f32 %v858_v61, %v834_v36  ;;  %v914_v7 = vsel %vm913_vm9, %v912_v56, %v911_v5  ;;  %v891_v10 = vadd.f32 %v859_v63, %v835_v28  ;;  %v892_v14 = vadd.f32 %v860_v1, %v836_v41 }
 0x132   : > { %v930_v8 = vrot.slane %v886_v3, 7  ;;  %v932_v9 = vrot.slane %v887_v6, 6  ;;  %v917_v11 = vsel %vm916_vm10, %v915_v2, %v914_v7  ;;  %v934_v17 = vrot.slane %v888_v24, 5 }
 0x133   : > { %v920_v15 = vsel %vm919_vm11, %v918_v25, %v917_v11  ;;  %v936_v21 = vrot.slane %v889_v4, 4  ;;  %v938_v26 = vrot.slane %v890_v49, 3  ;;  %v940_v30 = vrot.slane %v891_v10, 2 }
 0x134   : > { %v931_v16 = vsel %vm910_vm8, %v930_v8, %v885_v62  ;;  %v923_v18 = vsel %vm922_vm12, %v921_v12, %v920_v15  ;;  %v942_v32 = vrot.slane %v892_v14, 1 }
 0x135   : > { %v933_v20 = vsel %vm913_vm9, %v932_v9, %v931_v16  ;;  %v926_v22 = vsel %vm925_vm13, %v924_v13, %v923_v18 }
 0x136   : > { %v935_v23 = vsel %vm916_vm10, %v934_v17, %v933_v20  ;;  %v929_v27 = vsel %vm928_vm14, %v927_v19, %v926_v22 }
 0x137   : > { %v937_v29 = vsel %vm919_vm11, %v936_v21, %v935_v23  ;;  %946 = vst [vmem:[%s265_s19] sm:$0xff] %v929_v27 }
 0x138   : > { %v939_v31 = vsel %vm922_vm12, %v938_v26, %v937_v29 }
 0x139   : > { %v941_v33 = vsel %vm925_vm13, %v940_v30, %v939_v31 }
 0x13a   : > { %v943_v35 = vsel %vm928_vm14, %v942_v32, %v941_v33 }
 0x13b   : > { %947 = vst [vmem:[%s265_s19 + $0x8] sm:$0xff] %v943_v35 }
 0x13c   : > { %1356 = shalt.err (!%p1353_p10)
}
 0x13d   : > { %s1412_s6 = smov 128   ;;  %s1413_s27 = smov 8  }
 0x13e   : > { %1136 = dma.vmem_to_hbm [thread:$0]  (%p1524_p3), %s962_s13, 256, %s964_s20, %s949_s23, %s1412_s6, %s1412_s6, %s1413_s27  }
 0x13f PF: > { %s978_s28 = sand.u32 1, %s1391_s15   ;;  %p1744_p12 = scmp.ge.s32.totalorder %s1403_s18, 2 }
 0x140   : > { %s979_s21 = scalar_lea.sflag [#allocation4], %s978_s28 }
 0x141   : > { %p1153_p13 = pnand %p1744_p12, %p1474_p6 }
 0x143   : > { %p1154_p0 = pneg %p1153_p13 }
 0x145   : > { %1386 = dma.done.wait (%p1154_p0), %s979_s21, 256  }
 0x146   : > { %1388 = vsyncadd (%p1154_p0), %s979_s21, 4294967040  ;;  %p19_p5 = scmp.ge.s32.totalorder %s1511_s25, 4   ;;  %s1745_s15 = smov %s1395_s16 }
 0x147   : > { %s1746_s16 = smov %s1399_s17  ;;  %s1747_s17 = smov %s1520_s30 }
 0x148   : > { %s1748_s18 = smov %s1511_s25  ;;  %21 = sbr.rel (!%p19_p5) target bundleno = 7 (0x7), region = 98 }
 0x14d   :  { %985 = vsyncpa [#allocation3], 1 }
 0x14e   :  { %987 = vsyncpa [#allocation3 + $0x1], 1 }
 0x14f   :  { %988 = vsyncpa [#allocation6], 1 }
 0x150   :  { %989 = vsyncpa [#allocation9], 1 }
 0x151   :  { %990 = vsyncpa [#allocation4], 1 }
 0x152   :  { %992 = vsyncpa [#allocation4 + $0x1], 1 }

</bundles_post_ra>
